<compile_context>
chip_gen: v7x
topology: tpu7x:2x2x1
jax: 0.10.0
libtpu: 0.0.40
codegen_flags: <defaults>
</compile_context>

<pallas_src>
import jax
import jax.numpy as jnp
from jax import lax
from jax.experimental import pallas as pl
from jax.experimental.pallas import tpu as pltpu


_TARGET_BLOCK_BYTES = 8 << 20   # ~8 MiB of real HBM data per input per grid step
_VMEM_LIMIT_BYTES = 48 << 20    # 2 inputs x 2 buffers x 8 MiB + accumulators + headroom
                                # (fits v5e/v6e 128 MiB and v7x 64 MiB physical VMEM)


def _sublane_multiple(itemsize):
    # Minimum second-to-minor tile: 8 for 4-byte, 16 for 2-byte, 32 for 1-byte.
    return max(8, 32 // itemsize)


def _pick_block_rows(nc, hw, itemsize, sub):
    """Rows per grid step, sized on real (unpadded) HBM bytes streamed."""
    if nc <= sub:
        return nc                      # single block == full array dim
    row_bytes = hw * itemsize
    rows = max(sub, ((_TARGET_BLOCK_BYTES // row_bytes) // sub) * sub)
    return min(rows, (nc // sub) * sub)


def gmc_loss(out_train, noise, imgn_train):
    assert out_train.ndim == 4 and noise.ndim == 4
    assert out_train.shape == noise.shape, "out_train / noise must match"
    n, c, h, w = out_train.shape
    assert h > 1 and w > 1, "TV counts are zero for H==1 or W==1"

    nc = n * c
    hw = h * w
    itemsize = jnp.dtype(out_train.dtype).itemsize
    sub = _sublane_multiple(itemsize)

    blk = _pick_block_rows(nc, hw, itemsize, sub)
    grid_n = pl.cdiv(nc, blk)
    needs_row_mask = (nc % blk) != 0

    slab = min(blk, sub)               # rows handled per inner-loop iteration
    nslabs = blk // slab

    # Python-float constants baked into the kernel (NOT jnp arrays, which
    # would be captured as kernel constants and fail to trace).
    inv_count_h = 1.0 / (c * (h - 1) * w)   # == noise counts (same shape, asserted)
    inv_count_w = 1.0 / (c * h * (w - 1))
    inv_l2 = 1.0 / (imgn_train.shape[0] * 2)

    # Lane-dense view: (N*C, H*W).  Free reshape, no copy.
    out2 = out_train.reshape(nc, hw)
    noise2 = noise.reshape(nc, hw)

    def kernel(o_ref, x_ref, loss_ref, acc_l2, acc_tv):
        i = pl.program_id(0)

        @pl.when(i == 0)
        def _init():
            acc_l2[...] = jnp.zeros_like(acc_l2)
            acc_tv[...] = jnp.zeros_like(acc_tv)

        # Loop-invariant lane masks folded into the 1/count scale factors.
        # Flattened lane index p = row*W + col:
        #   vertical   diff x[p] - x[p-W] is valid for p >= W       ((H-1)*W terms)
        #   horizontal diff x[p] - x[p-1] is valid for p % W != 0   (H*(W-1) terms)
        lane = lax.broadcasted_iota(jnp.int32, (slab, hw), 1)
        h_scale = jnp.where(lane >= w, inv_count_h, 0.0).astype(jnp.float32)
        w_scale = jnp.where(lane % w != 0, inv_count_w, 0.0).astype(jnp.float32)

        base_row = i * blk

        def slab_step(s):
            r0 = s * slab
            if not isinstance(r0, int):
                r0 = pl.multiple_of(r0, slab)
            o = o_ref[pl.ds(r0, slab), :].astype(jnp.float32)
            x = x_ref[pl.ds(r0, slab), :].astype(jnp.float32)
            if needs_row_mask:
                rid = lax.broadcasted_iota(jnp.int32, (slab, hw), 0)
                valid = (base_row + r0 + rid) < nc
                o = jnp.where(valid, o, 0.0)
                x = jnp.where(valid, x, 0.0)

            d = o - x
            # Neighbour diffs via lane rolls (XLU); wrap positions are zeroed
            # by h_scale / w_scale before they reach the accumulator.
            dho = o - pltpu.roll(o, w, axis=1)
            dwo = o - pltpu.roll(o, 1, axis=1)
            dhn = x - pltpu.roll(x, w, axis=1)
            dwn = x - pltpu.roll(x, 1, axis=1)

            acc_l2[...] += d * d
            acc_tv[...] += (dho * dho - dhn * dhn) * h_scale \
                         + (dwo * dwo - dwn * dwn) * w_scale

        if nslabs <= 4:                      # tiny block: unroll at trace time
            for s in range(nslabs):
                slab_step(s)
        else:
            if nslabs % 4 == 0:
                unroll = 4
            elif nslabs % 2 == 0:
                unroll = 2
            else:
                unroll = 1

            def body(s, carry):
                slab_step(s)
                return carry

            lax.fori_loop(0, nslabs, body, 0, unroll=unroll)

        # Final cross-lane/sublane reduction + scalar epilogue: last step only.
        @pl.when(i == pl.num_programs(0) - 1)
        def _finish():
            l2_sum = jnp.sum(acc_l2[...])
            tv_diff = jnp.sum(acc_tv[...])     # tv(out) - tv(noise), pre-scaled
            loss_ref[0, 0] = 0.001 * jnp.abs(tv_diff) + l2_sum * inv_l2

    flops = 18 * nc * hw
    bytes_accessed = 2 * nc * hw * itemsize + 4

    # TODO(synk): on v7x, split the NC grid across the two TensorCores
    # (per-core accumulators + partial outputs summed in the wrapper); the
    # shared VMEM accumulators below require the serial "arbitrary" grid.
    loss = pl.pallas_call(
        kernel,
        out_shape=jax.ShapeDtypeStruct((1, 1), jnp.float32),
        grid=(grid_n,),
        in_specs=[
            pl.BlockSpec((blk, hw), lambda i: (i, 0)),
            pl.BlockSpec((blk, hw), lambda i: (i, 0)),
        ],
        out_specs=pl.BlockSpec((1, 1), lambda i: (0, 0),
                               memory_space=pltpu.MemorySpace.SMEM),
        scratch_shapes=[
            pltpu.VMEM((slab, hw), jnp.float32),   # acc_l2
            pltpu.VMEM((slab, hw), jnp.float32),   # acc_tvdiff (signed)
        ],
        compiler_params=pltpu.CompilerParams(
            dimension_semantics=("arbitrary",),
            vmem_limit_bytes=_VMEM_LIMIT_BYTES,
        ),
        cost_estimate=pl.CostEstimate(
            flops=flops, transcendentals=0, bytes_accessed=bytes_accessed),
    )(out2, noise2)
    return loss[0, 0]


def gmc_loss_ref(out_train, noise, imgn_train):
    n, c, h, w = out_train.shape
    _, c1, h1, w1 = noise.shape
    l2 = jnp.sum((out_train - noise) ** 2) / (imgn_train.shape[0] * 2)
    count_h = c * (h - 1) * w
    count_w = c * h * (w - 1)
    h_tv = jnp.sum((out_train[:, :, 1:, :] - out_train[:, :, : h - 1, :]) ** 2)
    w_tv = jnp.sum((out_train[:, :, :, 1:] - out_train[:, :, :, : w - 1]) ** 2)
    tv = h_tv / count_h + w_tv / count_w
    count_h1 = c1 * (h1 - 1) * w1
    count_w1 = c1 * h1 * (w1 - 1)
    h_tv1 = jnp.sum((noise[:, :, 1:, :] - noise[:, :, : h - 1, :]) ** 2)
    w_tv1 = jnp.sum((noise[:, :, :, 1:] - noise[:, :, :, : w - 1]) ** 2)
    tv1 = h_tv1 / count_h1 + w_tv1 / count_w1
    return 0.001 * jnp.abs(tv - tv1) + l2


if __name__ == "__main__":
    key = jax.random.PRNGKey(0)
    k1, k2, k3 = jax.random.split(key, 3)
    out_train = jax.random.normal(k1, (2, 4, 16, 16), dtype=jnp.float32)
    noise = jax.random.normal(k2, (2, 4, 16, 16), dtype=jnp.float32)
    imgn_train = jax.random.normal(k3, (2, 4, 16, 16), dtype=jnp.float32)

    loss = gmc_loss(out_train, noise, imgn_train)
    jax.block_until_ready(loss)

    ref = gmc_loss_ref(out_train, noise, imgn_train)
    assert jnp.allclose(loss, ref, rtol=1e-5, atol=1e-4), (loss, ref)
    print("KERNEL_OK")
</pallas_src>

<mosaic_0001>
module attributes {stable_mosaic.version = 11 : i64} {
  func.func @kernel(%arg0: i32, %arg1: memref<8x256xf32, #tpu.memory_space<vmem>>, %arg2: memref<8x256xf32, #tpu.memory_space<vmem>>, %arg3: memref<1x1xf32, #tpu.memory_space<smem>>, %arg4: memref<8x256xf32, #tpu.memory_space<vmem>>, %arg5: memref<8x256xf32, #tpu.memory_space<vmem>>) attributes {dimension_semantics = [#tpu.dimension_semantics<arbitrary>], iteration_bounds = array<i64: 1>, scalar_prefetch = 0 : i64, scratch_operands = 2 : i64, tpu.core_type = #tpu.core_type<tc>, window_params = [{transform_indices = @transform_0, window_bounds = array<i64: 8, 256>}, {transform_indices = @transform_1, window_bounds = array<i64: 8, 256>}, {transform_indices = @transform_2, window_bounds = array<i64: 1, 1>}]} {
    %c0_i32 = arith.constant 0 : i32
    %0 = arith.cmpi eq, %arg0, %c0_i32 : i32
    %1 = arith.extui %0 : i1 to i32
    %c0_i32_0 = arith.constant 0 : i32
    %2 = arith.cmpi ne, %1, %c0_i32_0 : i32
    scf.if %2 {
      %cst_27 = arith.constant 0.000000e+00 : f32
      %60 = vector.broadcast %cst_27 : f32 to vector<8x256xf32>
      %c0_28 = arith.constant 0 : index
      %c0_29 = arith.constant 0 : index
      %61 = vector.load %arg4[%c0_28, %c0_29] : memref<8x256xf32, #tpu.memory_space<vmem>>, vector<8x256xf32>
      tpu.vector_store %arg4[%c0_28, %c0_29], %60 {strides = array<i32>} : memref<8x256xf32, #tpu.memory_space<vmem>>, vector<8x256xf32>,
      %cst_30 = arith.constant 0.000000e+00 : f32
      %62 = vector.broadcast %cst_30 : f32 to vector<8x256xf32>
      %c0_31 = arith.constant 0 : index
      %c0_32 = arith.constant 0 : index
      %63 = vector.load %arg5[%c0_31, %c0_32] : memref<8x256xf32, #tpu.memory_space<vmem>>, vector<8x256xf32>
      tpu.vector_store %arg5[%c0_31, %c0_32], %62 {strides = array<i32>} : memref<8x256xf32, #tpu.memory_space<vmem>>, vector<8x256xf32>,
    } else {
    }
    %3 = tpu.iota {dimensions = array<i32: 1>} : vector<8x256xi32>
    %c16_i32 = arith.constant 16 : i32
    %4 = vector.broadcast %c16_i32 : i32 to vector<8x256xi32>
    %5 = arith.cmpi sge, %3, %4 : vector<8x256xi32>
    %cst = arith.constant 0.00104166672 : f32
    %cst_1 = arith.constant 0.000000e+00 : f32
    %6 = vector.broadcast %cst : f32 to vector<8x256xf32>
    %7 = vector.broadcast %cst_1 : f32 to vector<8x256xf32>
    %8 = arith.select %5, %6, %7 : vector<8x256xi1>, vector<8x256xf32>
    %c16_i32_2 = arith.constant 16 : i32
    %c0_i32_3 = arith.constant 0 : i32
    %9 = arith.cmpi eq, %c16_i32_2, %c0_i32_3 : i32
    %c1_i32 = arith.constant 1 : i32
    %10 = arith.select %9, %c1_i32, %c16_i32_2 : i32
    %11 = vector.broadcast %10 : i32 to vector<8x256xi32>
    %12 = arith.remsi %3, %11 : vector<8x256xi32>
    %c0_i32_4 = arith.constant 0 : i32
    %13 = vector.broadcast %c0_i32_4 : i32 to vector<8x256xi32>
    %14 = arith.cmpi ne, %12, %13 : vector<8x256xi32>
    %c0_i32_5 = arith.constant 0 : i32
    %15 = vector.broadcast %c0_i32_5 : i32 to vector<8x256xi32>
    %16 = arith.cmpi slt, %12, %15 : vector<8x256xi32>
    %c0_i32_6 = arith.constant 0 : i32
    %17 = arith.cmpi slt, %10, %c0_i32_6 : i32
    %18 = vector.broadcast %17 : i1 to vector<8x256xi1>
    %19 = vector.broadcast %18 : vector<8x256xi1> to vector<8x256xi1>
    %20 = arith.xori %16, %19 : vector<8x256xi1>
    %21 = arith.andi %20, %14 : vector<8x256xi1>
    %22 = vector.broadcast %10 : i32 to vector<8x256xi32>
    %23 = arith.addi %12, %22 : vector<8x256xi32>
    %24 = arith.select %21, %23, %12 : vector<8x256xi1>, vector<8x256xi32>
    %c0_i32_7 = arith.constant 0 : i32
    %25 = vector.broadcast %c0_i32_7 : i32 to vector<8x256xi32>
    %26 = arith.cmpi ne, %24, %25 : vector<8x256xi32>
    %cst_8 = arith.constant 0.00104166672 : f32
    %cst_9 = arith.constant 0.000000e+00 : f32
    %27 = vector.broadcast %cst_8 : f32 to vector<8x256xf32>
    %28 = vector.broadcast %cst_9 : f32 to vector<8x256xf32>
    %29 = arith.select %26, %27, %28 : vector<8x256xi1>, vector<8x256xf32>
    %c0 = arith.constant 0 : index
    %c0_10 = arith.constant 0 : index
    %30 = vector.load %arg1[%c0, %c0_10] : memref<8x256xf32, #tpu.memory_space<vmem>>, vector<8x256xf32>
    %c0_11 = arith.constant 0 : index
    %c0_12 = arith.constant 0 : index
    %31 = vector.load %arg2[%c0_11, %c0_12] : memref<8x256xf32, #tpu.memory_space<vmem>>, vector<8x256xf32>
    %32 = arith.subf %30, %31 : vector<8x256xf32>
    %c16_i32_13 = arith.constant 16 : i32
    %33 = tpu.dynamic_rotate %30 by %c16_i32_13 dim 1 : vector<8x256xf32>, i32 -> vector<8x256xf32>
    %34 = arith.subf %30, %33 : vector<8x256xf32>
    %c1_i32_14 = arith.constant 1 : i32
    %35 = tpu.dynamic_rotate %30 by %c1_i32_14 dim 1 : vector<8x256xf32>, i32 -> vector<8x256xf32>
    %36 = arith.subf %30, %35 : vector<8x256xf32>
    %c16_i32_15 = arith.constant 16 : i32
    %37 = tpu.dynamic_rotate %31 by %c16_i32_15 dim 1 : vector<8x256xf32>, i32 -> vector<8x256xf32>
    %38 = arith.subf %31, %37 : vector<8x256xf32>
    %c1_i32_16 = arith.constant 1 : i32
    %39 = tpu.dynamic_rotate %31 by %c1_i32_16 dim 1 : vector<8x256xf32>, i32 -> vector<8x256xf32>
    %40 = arith.subf %31, %39 : vector<8x256xf32>
    %c0_17 = arith.constant 0 : index
    %c0_18 = arith.constant 0 : index
    %41 = vector.load %arg4[%c0_17, %c0_18] : memref<8x256xf32, #tpu.memory_space<vmem>>, vector<8x256xf32>
    %42 = arith.mulf %32, %32 : vector<8x256xf32>
    %43 = arith.addf %41, %42 : vector<8x256xf32>
    %c0_19 = arith.constant 0 : index
    %c0_20 = arith.constant 0 : index
    %44 = vector.load %arg4[%c0_19, %c0_20] : memref<8x256xf32, #tpu.memory_space<vmem>>, vector<8x256xf32>
    tpu.vector_store %arg4[%c0_19, %c0_20], %43 {strides = array<i32>} : memref<8x256xf32, #tpu.memory_space<vmem>>, vector<8x256xf32>,
    %c0_21 = arith.constant 0 : index
    %c0_22 = arith.constant 0 : index
    %45 = vector.load %arg5[%c0_21, %c0_22] : memref<8x256xf32, #tpu.memory_space<vmem>>, vector<8x256xf32>
    %46 = arith.mulf %34, %34 : vector<8x256xf32>
    %47 = arith.mulf %38, %38 : vector<8x256xf32>
    %48 = arith.subf %46, %47 : vector<8x256xf32>
    %49 = arith.mulf %48, %8 : vector<8x256xf32>
    %50 = arith.mulf %36, %36 : vector<8x256xf32>
    %51 = arith.mulf %40, %40 : vector<8x256xf32>
    %52 = arith.subf %50, %51 : vector<8x256xf32>
    %53 = arith.mulf %52, %29 : vector<8x256xf32>
    %54 = arith.addf %49, %53 : vector<8x256xf32>
    %55 = arith.addf %45, %54 : vector<8x256xf32>
    %c0_23 = arith.constant 0 : index
    %c0_24 = arith.constant 0 : index
    %56 = vector.load %arg5[%c0_23, %c0_24] : memref<8x256xf32, #tpu.memory_space<vmem>>, vector<8x256xf32>
    tpu.vector_store %arg5[%c0_23, %c0_24], %55 {strides = array<i32>} : memref<8x256xf32, #tpu.memory_space<vmem>>, vector<8x256xf32>,
    %c0_i32_25 = arith.constant 0 : i32
    %57 = arith.cmpi eq, %arg0, %c0_i32_25 : i32
    %58 = arith.extui %57 : i1 to i32
    %c0_i32_26 = arith.constant 0 : i32
    %59 = arith.cmpi ne, %58, %c0_i32_26 : i32
    scf.if %59 {
      %c0_27 = arith.constant 0 : index
      %c0_28 = arith.constant 0 : index
      %60 = vector.load %arg4[%c0_27, %c0_28] : memref<8x256xf32, #tpu.memory_space<vmem>>, vector<8x256xf32>
      %61 = vector.shape_cast %60 : vector<8x256xf32> to vector<1x8x256xf32>
      %cst_29 = arith.constant dense<0.000000e+00> : vector<1xf32>
      %62 = vector.multi_reduction <add>, %61, %cst_29 [1, 2] : vector<1x8x256xf32> to vector<1xf32>
      %63 = vector.shape_cast %62 : vector<1xf32> to vector<1x1x1xf32>
      %64 = vector.extract %63[0, 0, 0] : f32 from vector<1x1x1xf32>
      %c0_30 = arith.constant 0 : index
      %c0_31 = arith.constant 0 : index
      %65 = vector.load %arg5[%c0_30, %c0_31] : memref<8x256xf32, #tpu.memory_space<vmem>>, vector<8x256xf32>
      %66 = vector.shape_cast %65 : vector<8x256xf32> to vector<1x8x256xf32>
      %cst_32 = arith.constant dense<0.000000e+00> : vector<1xf32>
      %67 = vector.multi_reduction <add>, %66, %cst_32 [1, 2] : vector<1x8x256xf32> to vector<1xf32>
      %68 = vector.shape_cast %67 : vector<1xf32> to vector<1x1x1xf32>
      %69 = vector.extract %68[0, 0, 0] : f32 from vector<1x1x1xf32>
      %70 = math.absf %69 : f32
      %cst_33 = arith.constant 1.000000e-03 : f32
      %71 = arith.mulf %cst_33, %70 : f32
      %cst_34 = arith.constant 2.500000e-01 : f32
      %72 = arith.mulf %64, %cst_34 : f32
      %73 = arith.addf %71, %72 : f32
      %c0_35 = arith.constant 0 : index
      %c0_36 = arith.constant 0 : index
      %74 = memref.load %arg3[%c0_35, %c0_36] : memref<1x1xf32, #tpu.memory_space<smem>>
      memref.store %73, %arg3[%c0_35, %c0_36] : memref<1x1xf32, #tpu.memory_space<smem>>
    } else {
    }
    return
  }
  func.func @transform_0(%arg0: i32) -> (i32, i32) {
    %c0_i32 = arith.constant 0 : i32
    %c0_i32_0 = arith.constant 0 : i32
    return %arg0, %c0_i32 : i32, i32
  }
  func.func @transform_1(%arg0: i32) -> (i32, i32) {
    %c0_i32 = arith.constant 0 : i32
    %c0_i32_0 = arith.constant 0 : i32
    return %arg0, %c0_i32 : i32, i32
  }
  func.func @transform_2(%arg0: i32) -> (i32, i32) {
    %c0_i32 = arith.constant 0 : i32
    %c0_i32_0 = arith.constant 0 : i32
    %c0_i32_1 = arith.constant 0 : i32
    return %c0_i32, %c0_i32_0 : i32, i32
  }
}

</mosaic_0001>

<bundles_post_ra>
// kernel: tpu_custom_call.1
= control target key start
LH: loop header
LB: loop body
LE: loop exit
PB: predicated region body
PF: predicated region fallthrough
CT: control target
= control target key end

     0   :  { %7 = vsyncpa [#allocation5], 0  ;;  %s331_s0 = inlined_call_operand.hbm [shape: f32[8,256], index: 0, kind: input, shape index: {}]   ;;  %s332_s1 = inlined_call_operand.hbm [shape: f32[8,256], index: 1, kind: input, shape index: {}]   ;;  %s333_s2 = inlined_call_operand.hbm [shape: f32[1,1], index: 2, kind: output, shape index: {}]  }
   0x1   :  { %8 = vsyncpa [#allocation8], 0 }
   0x2   :  { %9 = vsyncpa [#allocation6], 0  ;;  %s269_s9 = smov [#allocation4]   ;;  %s270_s11 = smov [#allocation7]  }
   0x3   :  { %s16_s10 = sshll.u32 %s269_s9, 4  ;;  %s26_s12 = sshll.u32 %s270_s11, 4  ;;  %s17_s10 = int_to_ptr.vmem [resolvable:$true] %s16_s10  ;;  %s27_s12 = int_to_ptr.vmem [resolvable:$true] %s26_s12 }
   0x4   :  { %s209_s15 = scalar_lea.hbm %s331_s0, 256 }
   0x5   :  { %p210_p0 = scmp.ne.s32.totalorder %s331_s0, %s209_s15  ;;  %p213_p1 = scmp.lt.u32.totalorder %s209_s15, %s331_s0 }
   0x7   :  { %p215_p2 = pnand %p213_p1, %p210_p0 }
   0x9   :  { %218 = shalt.err (!%p215_p2)
}
   0xa   :  { %s219_s20 = scalar_lea.vmem %s17_s10, 256  ;;  %p224_p4 = scmp.lt.s32.totalorder %s17_s10, %s17_s10 }
   0xb   :  { %p220_p3 = scmp.ne.s32.totalorder %s17_s10, %s219_s20  ;;  %p225_p5 = scmp.lt.s32.totalorder %s219_s20, %s219_s20 }
   0xd   :  { %p226_p6 = por %p225_p5, %p224_p4 }
   0xf   :  { %p227_p7 = pnand %p226_p6, %p220_p3 }
  0x11   :  { %230 = shalt.err (!%p227_p7)
}
  0x12   :  { %19 = dma.hbm_to_vmem [thread:$0]  %s331_s0, 256, %s17_s10, [#allocation5]  }
  0x13   :  { %s231_s25 = scalar_lea.hbm %s332_s1, 256 }
  0x14   :  { %p232_p8 = scmp.ne.s32.totalorder %s332_s1, %s231_s25  ;;  %p235_p9 = scmp.lt.u32.totalorder %s231_s25, %s332_s1 }
  0x16   :  { %p237_p10 = pnand %p235_p9, %p232_p8 }
  0x18   :  { %240 = shalt.err (!%p237_p10)
}
  0x19   :  { %s241_s30 = scalar_lea.vmem %s27_s12, 256  ;;  %p246_p12 = scmp.lt.s32.totalorder %s27_s12, %s27_s12 }
  0x1a   :  { %p242_p11 = scmp.ne.s32.totalorder %s27_s12, %s241_s30  ;;  %p247_p13 = scmp.lt.s32.totalorder %s241_s30, %s241_s30 }
  0x1c   :  { %p248_p0 = por %p247_p13, %p246_p12 }
  0x1e   :  { %p249_p1 = pnand %p248_p0, %p242_p11 }
  0x20   :  { %252 = shalt.err (!%p249_p1)
}
  0x21   :  { %29 = dma.hbm_to_vmem [thread:$0]  %s332_s1, 256, %s27_s12, [#allocation8]  }
  0x22   :  { %263 = dma.done.wait [#allocation5], 256  }
  0x23   :  { %264 = vsyncadd [#allocation5], 4294967040 }
  0x24   :  { %265 = dma.done.wait [#allocation8], 256  }
  0x25   :  { %266 = vsyncadd [#allocation8], 4294967040  ;;  %v79_v0 = vld [vmem:[#allocation4] sm:$0xff]  ;;  %s271_s4 = smov 1   ;;  %s272_s5 = smov 16   ;;  %v80_v1 = vld [vmem:[#allocation4 + $0x8] sm:$0xff]  ;;  %v44_v9 = vlaneseq }
  0x26   :  { %94 = vrot.lane.b32.xlu1 %v79_v0, %s271_s4  ;;  %85 = vrot.lane.b32.xlu0 %v79_v0, %s272_s5  ;;  %v82_v2 = vld [vmem:[#allocation7 + $0x8] sm:$0xff]  ;;  %v81_v3 = vld [vmem:[#allocation7] sm:$0xff]  ;;  %v273_v48 = vmov 0.0   ;;  %s253_s13 = scalar_lea.hbm %s333_s2, 16 }
  0x27   :  { %v83_v4 = vsub.f32 %v79_v0, %v81_v3  ;;  %v84_v5 = vsub.f32 %v80_v1, %v82_v2  ;;  %v45_v12 = vand.u32 127, %v44_v9  ;;  %p254_p2 = scmp.ne.s32.totalorder %s333_s2, %s253_s13  ;;  %p257_p3 = scmp.lt.u32.totalorder %s253_s13, %s333_s2 }
  0x29   :  { %v121_v6 = vmul.f32 %v83_v4, %v83_v4  ;;  %v122_v7 = vmul.f32 %v84_v5, %v84_v5  ;;  %vm89_vm0 = vcmp.lt.s32.totalorder %v45_v12, 16  ;;  %vm98_vm1 = vcmp.lt.s32.totalorder %v45_v12, 1  ;;  %p259_p4 = pnand %p257_p3, %p254_p2 }
  0x2a   :  { %96 = vrot.lane.b32.xlu1 %v80_v1, %s271_s4  ;;  %87 = vrot.lane.b32.xlu0 %v80_v1, %s272_s5  ;;  %v46_v15 = vadd.s32 128, %v45_v12  ;;  %v55_v24 = vand.u32 15, %v45_v12  ;;  %vm47_vm2 = vcmp.ge.s32.totalorder %v45_v12, 16 }
  0x2b   :  { %v156_v8 = vadd.f32 %v122_v7, %v121_v6  ;;  %v49_v49 = vsel %vm47_vm2, 0.0010416667, %v273_v48 }
  0x2c   :  { %v62_v25 = vand.u32 15, %v46_v15  ;;  %vm75_vm3 = vcmp.ne.s32.totalorder %v55_v24, 0 }
  0x2d   :  { %v77_v50 = vsel %vm75_vm3, 0.0010416667, %v273_v48 }
  0x2e   :  { %105 = vrot.lane.b32.xlu1 %v82_v2, %s272_s5  ;;  %103 = vrot.lane.b32.xlu0 %v81_v3, %s272_s5  ;;  %vm76_vm4 = vcmp.ne.s32.totalorder %v62_v25, 0 }
  0x2f   :  { %v78_v51 = vsel %vm76_vm4, 0.0010416667, %v273_v48 }
  0x32   :  { %113 = vrot.lane.b32.xlu1 %v82_v2, %s271_s4  ;;  %111 = vrot.lane.b32.xlu0 %v81_v3, %s271_s4 }
  0x51   :  { %157 = vadd.xlane.f32.xlu0 %v156_v8 }
  0x98   :  { %v95_v10 = vpop.permute.xlu1 %94  ;;  %v86_v11 = vpop.permute.xlu0 %85 }
  0x9c   :  { %v97_v13 = vpop.permute.xlu1 %96  ;;  %v88_v14 = vpop.permute.xlu0 %87 }
  0x9d   :  { %v90_v16 = vsel %vm89_vm0, %v86_v11, %v88_v14  ;;  %v91_v17 = vsel %vm89_vm0, %v88_v14, %v86_v11  ;;  %v99_v18 = vsel %vm98_vm1, %v95_v10, %v97_v13  ;;  %v100_v19 = vsel %vm98_vm1, %v97_v13, %v95_v10 }
  0x9e   :  { %v92_v26 = vsub.f32 %v79_v0, %v91_v17  ;;  %v93_v27 = vsub.f32 %v80_v1, %v90_v16  ;;  %v101_v30 = vsub.f32 %v79_v0, %v100_v19  ;;  %v102_v31 = vsub.f32 %v80_v1, %v99_v18 }
  0xa0   :  { %v106_v20 = vpop.permute.xlu1 %105  ;;  %v104_v21 = vpop.permute.xlu0 %103  ;;  %v129_v38 = vmul.f32 %v92_v26, %v92_v26  ;;  %v130_v39 = vmul.f32 %v93_v27, %v93_v27  ;;  %v137_v42 = vmul.f32 %v101_v30, %v101_v30  ;;  %v138_v43 = vmul.f32 %v102_v31, %v102_v31 }
  0xa1   :  { %v107_v22 = vsel %vm89_vm0, %v104_v21, %v106_v20  ;;  %v108_v23 = vsel %vm89_vm0, %v106_v20, %v104_v21 }
  0xa2   :  { %v109_v28 = vsub.f32 %v81_v3, %v108_v23  ;;  %v110_v29 = vsub.f32 %v82_v2, %v107_v22 }
  0xa4   :  { %v131_v32 = vmul.f32 %v109_v28, %v109_v28  ;;  %v132_v33 = vmul.f32 %v110_v29, %v110_v29  ;;  %v114_v34 = vpop.permute.xlu1 %113  ;;  %v112_v35 = vpop.permute.xlu0 %111 }
  0xa5   :  { %v115_v36 = vsel %vm98_vm1, %v112_v35, %v114_v34  ;;  %v116_v37 = vsel %vm98_vm1, %v114_v34, %v112_v35 }
  0xa6   :  { %v117_v40 = vsub.f32 %v81_v3, %v116_v37  ;;  %v118_v41 = vsub.f32 %v82_v2, %v115_v36  ;;  %v133_v44 = vsub.f32 %v129_v38, %v131_v32  ;;  %v134_v45 = vsub.f32 %v130_v39, %v132_v33 }
  0xa8   :  { %v139_v46 = vmul.f32 %v117_v40, %v117_v40  ;;  %v140_v47 = vmul.f32 %v118_v41, %v118_v41  ;;  %v135_v54 = vmul.f32 %v133_v44, %v49_v49  ;;  %v136_v55 = vmul.f32 0.0010416667, %v134_v45 }
  0xaa   :  { %v141_v52 = vsub.f32 %v137_v42, %v139_v46  ;;  %v142_v53 = vsub.f32 %v138_v43, %v140_v47 }
  0xac   :  { %v143_v56 = vmul.f32 %v141_v52, %v77_v50  ;;  %v144_v57 = vmul.f32 %v142_v53, %v78_v51 }
  0xae   :  { %v145_v58 = vadd.f32 %v143_v56, %v135_v54  ;;  %v146_v59 = vadd.f32 %v144_v57, %v136_v55 }
  0xb0   :  { %v168_v60 = vadd.f32 %v146_v59, %v145_v58 }
  0xb2   :  { %169 = vadd.xlane.f32.xlu1 %v168_v60 }
  0xde   :  { %v158_v61 = vpop.xlane.xlu0 %157 }
  0xdf   :  { %v159_v62 = vrot.slane %v158_v61, 4 }
  0xe1   :  { %v160_v63 = vadd.f32 %v159_v62, %v158_v61 }
  0xe3   :  { %v161_v0 = vrot.slane %v160_v63, 2 }
  0xe5   :  { %v162_v1 = vadd.f32 %v161_v0, %v160_v63 }
  0xe7   :  { %v163_v2 = vrot.slane %v162_v1, 1 }
  0xe9   :  { %v164_v3 = vadd.f32 %v163_v2, %v162_v1 }
  0xeb   :  { %199 = vpush %v164_v3 }
 0x11c   :  { %s200_s1 = spop %199 }
 0x11d   :  { %s180_s7 = smul.f32 0.25, %s200_s1 }
 0x13f   :  { %v170_v4 = vpop.xlane.xlu1 %169 }
 0x140   :  { %v171_v5 = vrot.slane %v170_v4, 4 }
 0x142   :  { %v172_v6 = vadd.f32 %v171_v5, %v170_v4 }
 0x144   :  { %v173_v7 = vrot.slane %v172_v6, 2 }
 0x146   :  { %v174_v8 = vadd.f32 %v173_v7, %v172_v6 }
 0x148   :  { %v175_v9 = vrot.slane %v174_v8, 1 }
 0x14a   :  { %v176_v10 = vadd.f32 %v175_v9, %v174_v8 }
 0x14c   :  { %201 = vpush %v176_v10 }
 0x17d   :  { %s202_s6 = spop %201 }
 0x17e   :  { %s178_s8 = sand.u32 2147483647, %s202_s6 }
 0x17f   :  { %s179_s9 = smul.f32 0.001, %s178_s8 }
 0x181   :  { %s181_s10 = sadd.f32 %s180_s7, %s179_s9 }
 0x183   :  { %183 = sst [smem:[#allocation9]] %s181_s10 }
 0x184   :  { %262 = shalt.err (!%p259_p4)
}
 0x185   :  { %s274_s18 = smov [#allocation9]  }
 0x186   :  { %191 = dma.smem_to_hbm %s274_s18, 16, %s333_s2, [#allocation6]  }
 0x187   :  { %267 = dma.done.wait [#allocation6], 16  }
 0x188   :  { %268 = vsyncadd [#allocation6], 4294967280 }
 0x189   :  { %195 = sfence }
 0x18a   :  { %196 = vsyncpa [#allocation5], 1 }
 0x18b   :  { %197 = vsyncpa [#allocation8], 1 }
 0x18c   :  { %198 = vsyncpa [#allocation6], 1 }

</bundles_post_ra>
